<compile_context>
chip_gen: v7x
topology: tpu7x:2x2x1
jax: 0.10.0
libtpu: 0.0.40
codegen_flags: <defaults>
</compile_context>

<pallas_src>
import functools

import jax
import jax.numpy as jnp
from jax.experimental import pallas as pl
from jax.experimental.pallas import tpu as pltpu


def _mlp_kernel(n_layers, x_ref, *refs):
    """refs = (w0, b0, w1, b1, ..., w_{L-1}, b_{L-1}, out_ref).

    x_ref:   (TILE_B, obs_dim)   batch tile, pipelined over the grid
    w_i:     (in_i, out_i)       VMEM-resident (bf16 fast path or f32)
    b_i:     (1, out_i)          VMEM-resident, f32
    out_ref: (TILE_B, action_dim)
    """
    out_ref = refs[-1]
    param_refs = refs[:-1]

    h = x_ref[...].astype(jnp.float32)
    for i in range(n_layers):
        w = param_refs[2 * i][...]
        b = param_refs[2 * i + 1][...].astype(jnp.float32)
        # MXU matmul: operands in the weight dtype (bf16 fast path), f32 accum.
        h = jnp.dot(h.astype(w.dtype), w, preferred_element_type=jnp.float32) + b
        if i < n_layers - 1:
            h = jnp.maximum(h, 0.0)  # ReLU on all but the last layer (f32 VPU)
    out_ref[...] = h.astype(out_ref.dtype)


def _round_up(x, m):
    return ((x + m - 1) // m) * m


def _pick_batch_tile(batch, obs_dim, out_dim, requested):
    """Batch tile: multiple of 8 (sublane), <= requested, VMEM-safe everywhere."""
    tile = min(_round_up(requested, 8), _round_up(batch, 8))
    tile = max(tile, 8)
    # Conservative budget: keep the double-buffered obs/out tiles well under
    # v7x's 32 MiB default scoped VMEM limit (weights are tiny and resident).
    budget_bytes = 16 * 1024 * 1024
    per_row_bytes = 2 * (obs_dim + out_dim) * 4  # 2 pipeline buffers, f32
    max_tile = max(8, (budget_bytes // per_row_bytes) // 8 * 8)
    return min(tile, max_tile)


def actor_forward(obs, params, *, tile_b=512, use_bf16_matmul=True):
    """obs: (batch, obs_dim) f32; params: list of (W, b), W (in, out), b (1, out)."""
    n_layers = len(params)
    batch, obs_dim = obs.shape
    action_dim = params[-1][0].shape[1]

    # Weights feed the MXU (bf16 fast path); biases stay f32 for the VPU.
    flat_params = []
    for w, b in params:
        flat_params.append(
            w.astype(jnp.bfloat16) if use_bf16_matmul else w.astype(jnp.float32))
        flat_params.append(b.astype(jnp.float32))

    tb = _pick_batch_tile(batch, obs_dim, action_dim, tile_b)
    padded_batch = _round_up(batch, tb)
    if padded_batch != batch:
        obs = jnp.pad(obs, ((0, padded_batch - batch), (0, 0)))
    grid = (padded_batch // tb,)

    in_specs = [pl.BlockSpec((tb, obs_dim), lambda i: (i, 0))]
    # Full-array, VMEM-resident weights/biases: DMA'd once, reused every step.
    in_specs += [pl.BlockSpec(memory_space=pltpu.MemorySpace.VMEM)
                 for _ in flat_params]

    out = pl.pallas_call(
        functools.partial(_mlp_kernel, n_layers),
        out_shape=jax.ShapeDtypeStruct((padded_batch, action_dim), obs.dtype),
        grid=grid,
        in_specs=in_specs,
        out_specs=pl.BlockSpec((tb, action_dim), lambda i: (i, 0)),
        compiler_params=pltpu.CompilerParams(
            dimension_semantics=("parallel",)),  # shards batch tiles across TCs on v7x
    )(obs, *flat_params)
    return out[:batch]


def init_actor_params(key, obs_dim, hidden, action_dim):
    """Deterministic init mimicking nn.Linear's uniform(-1/sqrt(fan_in), 1/sqrt(fan_in))."""
    nets_dim = [obs_dim] + list(hidden) + [action_dim]
    params = []
    for idx in range(len(nets_dim) - 1):
        fan_in, fan_out = nets_dim[idx], nets_dim[idx + 1]
        key, kw, kb = jax.random.split(key, 3)
        bound = 1.0 / (fan_in ** 0.5)
        w = jax.random.uniform(kw, (fan_in, fan_out), jnp.float32, -bound, bound)
        b = jax.random.uniform(kb, (1, fan_out), jnp.float32, -bound, bound)
        params.append((w, b))
    return params


def actor_forward_ref(obs, params, use_bf16_matmul=True):
    """Pure-JAX reference matching the PyTorch forward semantics.

    When use_bf16_matmul, the same bf16 rounding of matmul operands is applied
    so the comparison is apples-to-apples (accumulation is f32 in both)."""
    h = obs.astype(jnp.float32)
    for i, (w, b) in enumerate(params):
        w = w.astype(jnp.float32)
        if use_bf16_matmul:
            w = w.astype(jnp.bfloat16).astype(jnp.float32)
            h = h.astype(jnp.bfloat16).astype(jnp.float32)
        h = h @ w + b.astype(jnp.float32)
        if i < len(params) - 1:
            h = jnp.maximum(h, 0.0)
    return h


if __name__ == "__main__":
    # Shapes consistent with the module: Actor(obs_dim=16, action_dim=4, hidden=[32, 32])
    obs_dim, action_dim, hidden = 16, 4, [32, 32]

    key = jax.random.PRNGKey(0)
    key, k_params = jax.random.split(key)
    params = init_actor_params(k_params, obs_dim, hidden, action_dim)

    # One jitted function per (static) config so weights are not re-staged per call.
    fwd_bf16 = jax.jit(functools.partial(actor_forward, tile_b=128, use_bf16_matmul=True))
    fwd_f32 = jax.jit(functools.partial(actor_forward, tile_b=128, use_bf16_matmul=False))

    # 1) Batched rollout path: grid of 4 batch tiles, bf16 MXU operands.
    key, k_obs = jax.random.split(key)
    obs = jax.random.normal(k_obs, (512, obs_dim), jnp.float32)
    out = jax.block_until_ready(fwd_bf16(obs, params))
    ref = actor_forward_ref(obs, params, use_bf16_matmul=True)
    assert out.shape == (512, action_dim)
    assert jnp.allclose(out, ref, atol=1e-3, rtol=1e-3), "bf16-path mismatch vs reference"

    # 2) Exact-f32 path, tiny batch (tile clamps to the batch, single grid step).
    key, k_obs2 = jax.random.split(key)
    obs_small = jax.random.normal(k_obs2, (8, obs_dim), jnp.float32)
    out_small = jax.block_until_ready(fwd_f32(obs_small, params))
    ref_small = actor_forward_ref(obs_small, params, use_bf16_matmul=False)
    assert out_small.shape == (8, action_dim)
    assert jnp.allclose(out_small, ref_small, atol=1e-5, rtol=1e-5), "f32-path mismatch vs reference"

    # 3) Ragged batch (not a multiple of the tile) exercises the pad + slice path.
    key, k_obs3 = jax.random.split(key)
    obs_ragged = jax.random.normal(k_obs3, (50, obs_dim), jnp.float32)
    out_ragged = jax.block_until_ready(fwd_bf16(obs_ragged, params))
    ref_ragged = actor_forward_ref(obs_ragged, params, use_bf16_matmul=True)
    assert out_ragged.shape == (50, action_dim)
    assert jnp.allclose(out_ragged, ref_ragged, atol=1e-3, rtol=1e-3), "ragged-batch mismatch vs reference"

    print("KERNEL_OK")
</pallas_src>

<mosaic_0001>
module attributes {stable_mosaic.version = 11 : i64} {
  func.func @_mlp_kernel(%arg0: i32, %arg1: memref<128x16xf32, #tpu.memory_space<vmem>>, %arg2: memref<16x32xbf16, #tpu.memory_space<vmem>>, %arg3: memref<1x32xf32, #tpu.memory_space<vmem>>, %arg4: memref<32x32xbf16, #tpu.memory_space<vmem>>, %arg5: memref<1x32xf32, #tpu.memory_space<vmem>>, %arg6: memref<32x4xbf16, #tpu.memory_space<vmem>>, %arg7: memref<1x4xf32, #tpu.memory_space<vmem>>, %arg8: memref<128x4xf32, #tpu.memory_space<vmem>>) attributes {dimension_semantics = [#tpu.dimension_semantics<parallel>], iteration_bounds = array<i64: 4>, scalar_prefetch = 0 : i64, scratch_operands = 0 : i64, tpu.core_type = #tpu.core_type<tc>, window_params = [{transform_indices = @transform_0, window_bounds = array<i64: 128, 16>}, {pipeline_mode = #tpu.pipeline_mode<synchronous>, transform_indices = @transform_1, window_bounds = array<i64: 16, 32>}, {pipeline_mode = #tpu.pipeline_mode<synchronous>, transform_indices = @transform_2, window_bounds = array<i64: 1, 32>}, {pipeline_mode = #tpu.pipeline_mode<synchronous>, transform_indices = @transform_3, window_bounds = array<i64: 32, 32>}, {pipeline_mode = #tpu.pipeline_mode<synchronous>, transform_indices = @transform_4, window_bounds = array<i64: 1, 32>}, {pipeline_mode = #tpu.pipeline_mode<synchronous>, transform_indices = @transform_5, window_bounds = array<i64: 32, 4>}, {pipeline_mode = #tpu.pipeline_mode<synchronous>, transform_indices = @transform_6, window_bounds = array<i64: 1, 4>}, {transform_indices = @transform_7, window_bounds = array<i64: 128, 4>}]} {
    %c0 = arith.constant 0 : index
    %c0_0 = arith.constant 0 : index
    %0 = vector.load %arg1[%c0, %c0_0] : memref<128x16xf32, #tpu.memory_space<vmem>>, vector<128x16xf32>
    %c0_1 = arith.constant 0 : index
    %c0_2 = arith.constant 0 : index
    %1 = vector.load %arg2[%c0_1, %c0_2] : memref<16x32xbf16, #tpu.memory_space<vmem>>, vector<16x32xbf16>
    %c0_3 = arith.constant 0 : index
    %c0_4 = arith.constant 0 : index
    %2 = vector.load %arg3[%c0_3, %c0_4] : memref<1x32xf32, #tpu.memory_space<vmem>>, vector<1x32xf32>
    %3 = arith.truncf %0 : vector<128x16xf32> to vector<128x16xbf16>
    %cst = arith.constant dense<0.000000e+00> : vector<128x32xf32>
    %4 = tpu.matmul %3, %1, %cst {dimension_numbers = #tpu.dot_dimension_numbers<[1], [0], [0], [1], [0, 0, 1, 1], [], []>} : vector<128x16xbf16>, vector<16x32xbf16>, vector<128x32xf32> -> vector<128x32xf32>
    %5 = vector.broadcast %2 : vector<1x32xf32> to vector<128x32xf32>
    %6 = arith.addf %4, %5 : vector<128x32xf32>
    %cst_5 = arith.constant 0.000000e+00 : f32
    %7 = vector.broadcast %cst_5 : f32 to vector<128x32xf32>
    %8 = arith.maximumf %6, %7 : vector<128x32xf32>
    %c0_6 = arith.constant 0 : index
    %c0_7 = arith.constant 0 : index
    %9 = vector.load %arg4[%c0_6, %c0_7] : memref<32x32xbf16, #tpu.memory_space<vmem>>, vector<32x32xbf16>
    %c0_8 = arith.constant 0 : index
    %c0_9 = arith.constant 0 : index
    %10 = vector.load %arg5[%c0_8, %c0_9] : memref<1x32xf32, #tpu.memory_space<vmem>>, vector<1x32xf32>
    %11 = arith.truncf %8 : vector<128x32xf32> to vector<128x32xbf16>
    %cst_10 = arith.constant dense<0.000000e+00> : vector<128x32xf32>
    %12 = tpu.matmul %11, %9, %cst_10 {dimension_numbers = #tpu.dot_dimension_numbers<[1], [0], [0], [1], [0, 0, 1, 1], [], []>} : vector<128x32xbf16>, vector<32x32xbf16>, vector<128x32xf32> -> vector<128x32xf32>
    %13 = vector.broadcast %10 : vector<1x32xf32> to vector<128x32xf32>
    %14 = arith.addf %12, %13 : vector<128x32xf32>
    %cst_11 = arith.constant 0.000000e+00 : f32
    %15 = vector.broadcast %cst_11 : f32 to vector<128x32xf32>
    %16 = arith.maximumf %14, %15 : vector<128x32xf32>
    %c0_12 = arith.constant 0 : index
    %c0_13 = arith.constant 0 : index
    %17 = vector.load %arg6[%c0_12, %c0_13] : memref<32x4xbf16, #tpu.memory_space<vmem>>, vector<32x4xbf16>
    %c0_14 = arith.constant 0 : index
    %c0_15 = arith.constant 0 : index
    %18 = vector.load %arg7[%c0_14, %c0_15] : memref<1x4xf32, #tpu.memory_space<vmem>>, vector<1x4xf32>
    %19 = arith.truncf %16 : vector<128x32xf32> to vector<128x32xbf16>
    %cst_16 = arith.constant dense<0.000000e+00> : vector<128x4xf32>
    %20 = tpu.matmul %19, %17, %cst_16 {dimension_numbers = #tpu.dot_dimension_numbers<[1], [0], [0], [1], [0, 0, 1, 1], [], []>} : vector<128x32xbf16>, vector<32x4xbf16>, vector<128x4xf32> -> vector<128x4xf32>
    %21 = vector.broadcast %18 : vector<1x4xf32> to vector<128x4xf32>
    %22 = arith.addf %20, %21 : vector<128x4xf32>
    %c0_17 = arith.constant 0 : index
    %c0_18 = arith.constant 0 : index
    %23 = vector.load %arg8[%c0_17, %c0_18] : memref<128x4xf32, #tpu.memory_space<vmem>>, vector<128x4xf32>
    tpu.vector_store %arg8[%c0_17, %c0_18], %22 {strides = array<i32>} : memref<128x4xf32, #tpu.memory_space<vmem>>, vector<128x4xf32>,
    return
  }
  func.func @transform_0(%arg0: i32) -> (i32, i32) {
    %c0_i32 = arith.constant 0 : i32
    %c0_i32_0 = arith.constant 0 : i32
    return %arg0, %c0_i32 : i32, i32
  }
  func.func @transform_1(%arg0: i32) -> (i32, i32) {
    %c0_i32 = arith.constant 0 : i32
    %c0_i32_0 = arith.constant 0 : i32
    %c0_i32_1 = arith.constant 0 : i32
    return %c0_i32, %c0_i32_0 : i32, i32
  }
  func.func @transform_2(%arg0: i32) -> (i32, i32) {
    %c0_i32 = arith.constant 0 : i32
    %c0_i32_0 = arith.constant 0 : i32
    %c0_i32_1 = arith.constant 0 : i32
    return %c0_i32, %c0_i32_0 : i32, i32
  }
  func.func @transform_3(%arg0: i32) -> (i32, i32) {
    %c0_i32 = arith.constant 0 : i32
    %c0_i32_0 = arith.constant 0 : i32
    %c0_i32_1 = arith.constant 0 : i32
    return %c0_i32, %c0_i32_0 : i32, i32
  }
  func.func @transform_4(%arg0: i32) -> (i32, i32) {
    %c0_i32 = arith.constant 0 : i32
    %c0_i32_0 = arith.constant 0 : i32
    %c0_i32_1 = arith.constant 0 : i32
    return %c0_i32, %c0_i32_0 : i32, i32
  }
  func.func @transform_5(%arg0: i32) -> (i32, i32) {
    %c0_i32 = arith.constant 0 : i32
    %c0_i32_0 = arith.constant 0 : i32
    %c0_i32_1 = arith.constant 0 : i32
    return %c0_i32, %c0_i32_0 : i32, i32
  }
  func.func @transform_6(%arg0: i32) -> (i32, i32) {
    %c0_i32 = arith.constant 0 : i32
    %c0_i32_0 = arith.constant 0 : i32
    %c0_i32_1 = arith.constant 0 : i32
    return %c0_i32, %c0_i32_0 : i32, i32
  }
  func.func @transform_7(%arg0: i32) -> (i32, i32) {
    %c0_i32 = arith.constant 0 : i32
    %c0_i32_0 = arith.constant 0 : i32
    return %arg0, %c0_i32 : i32, i32
  }
}

</mosaic_0001>

<bundles_post_ra>
// kernel: actor_forward.1
= control target key start
LH: loop header
LB: loop body
LE: loop exit
PB: predicated region body
PF: predicated region fallthrough
CT: control target
= control target key end

     0   :  { %s1047_s24 = smov 0   ;;  %s1153_s0 = inlined_call_operand.vmem [shape: f32[512,16], index: 0, kind: input, shape index: {}]   ;;  %s1154_s1 = inlined_call_operand.vmem [shape: bf16[16,32], index: 1, kind: input, shape index: {}]   ;;  %s1155_s2 = inlined_call_operand.vmem [shape: f32[1,32], index: 2, kind: input, shape index: {}]   ;;  %s1156_s3 = inlined_call_operand.vmem [shape: bf16[32,32], index: 3, kind: input, shape index: {}]   ;;  %s1157_s4 = inlined_call_operand.vmem [shape: f32[1,32], index: 4, kind: input, shape index: {}]   ;;  %s1158_s5 = inlined_call_operand.vmem [shape: bf16[32,4], index: 5, kind: input, shape index: {}]   ;;  %s1159_s6 = inlined_call_operand.vmem [shape: f32[1,4], index: 6, kind: input, shape index: {}]   ;;  %s1160_s7 = inlined_call_operand.vmem [shape: f32[512,4], index: 7, kind: output, shape index: {}]  }
   0x1 LB: > { %s854_s25 = sadd.s32 4294967295, %s1005_s24   ;;  %p858_p0 = scmp.ge.s32.totalorder %s1005_s24, 1  ;;  %s1005_s24 = sphi %s1047_s24, %s17_s24  }
   0x2   : > { %p238_p1 = scmp.lt.s32.totalorder %s1005_s24, 5 }
   0x4   : > { %p239_p2 = pnand %p858_p0, %p238_p1 }
   0x5   : > { %v994_v0 = vld [vmem:[%s1154_s1] sm:$0xff] (!%p239_p2)   ;;  %s859_s28 = sshll.u32 (!%p239_p2), %s854_s25, 4  ;;  %vm322_vm0 = vcmask (!%p239_p2), 130048   ;;  %v996_v26 = vld [vmem:[%s1156_s3 + $0x8] sm:$0xff] (!%p239_p2)   ;;  %vm491_vm1 = vcmask (!%p239_p2), 261120   ;;  %vm781_vm2 = vcmask (!%p239_p2), 31744  }
   0x6   : > { %242 = sbr.rel (%p239_p2) target bundleno = 706 (0x2c2), region = 48  ;;  %p271_p3 = scmp.lt.s32.totalorder (!%p239_p2), %s859_s28, 63  ;;  %926 = vmatprep.subr.bf16.mxu0 (!%p239_p2), %v994_v0  ;;  %984 = vmatprep.subr.bf16.mxu1 (!%p239_p2), %v994_v0  ;;  %v995_v1 = vld [vmem:[%s1156_s3] sm:$0xff] (!%p239_p2)  }
   0x7   : > { %927 = vmatpush3.bf16.msra.mxu0 (!%p239_p2), %v994_v0  ;;  %985 = vmatpush3.bf16.msra.mxu1 (!%p239_p2), %v994_v0  ;;  %v997_v27 = vld [vmem:[%s1158_s5] sm:$0xff] (!%p239_p2)  }
   0x8   : > { %944 = vmatprep.subr.bf16.mxu1 (!%p239_p2), %v995_v1  ;;  %964 = vmatprep.subr.bf16.mxu0 (!%p239_p2), %v997_v27  ;;  %v863_v28 = vld [vmem:[%s1155_s2] ss:$0 sm:$0xff] (!%p239_p2) }
   0xd   : > { %s1162_s28 = smov (!%p271_p3, %s859_s28), 63 }
   0xe   : > { %s860_s8 = sshll.u32 %s1162_s28, 3 }
   0xf   : > { %s274_s11 = scalar_lea.vmem %s1153_s0, %s860_s8  ;;  %s1116_s27 = scalar_lea.vmem %s1160_s7, %s860_s8 }
  0x10   : > { %v283_v2 = vld [vmem:[%s274_s11] sm:$0xff]  ;;  %v284_v3 = vld [vmem:[%s274_s11 + $0x8] sm:$0xff]  ;;  %v285_v4 = vld [vmem:[%s274_s11 + $0x10] sm:$0xff] }
  0x11   : > { %v302_v5 = vpack.c.bf16 %v284_v3, %v283_v2  ;;  %v286_v6 = vld [vmem:[%s274_s11 + $0x18] sm:$0xff]  ;;  %v287_v7 = vld [vmem:[%s274_s11 + $0x20] sm:$0xff]  ;;  %v288_v8 = vld [vmem:[%s274_s11 + $0x28] sm:$0xff] }
  0x12   : > { %v303_v9 = vpack.c.bf16 %v286_v6, %v285_v4  ;;  %v304_v10 = vpack.c.bf16 %v288_v8, %v287_v7  ;;  %v291_v11 = vld [vmem:[%s274_s11 + $0x40] sm:$0xff]  ;;  %v292_v12 = vld [vmem:[%s274_s11 + $0x48] sm:$0xff]  ;;  %v293_v13 = vld [vmem:[%s274_s11 + $0x50] sm:$0xff] }
  0x13   : > { %928 = vmatprep.mubr.msk.bf16.mxu0 %vm322_vm0, %v302_v5  ;;  %v294_v14 = vld [vmem:[%s274_s11 + $0x58] sm:$0xff]  ;;  %v306_v15 = vpack.c.bf16 %v292_v12, %v291_v11  ;;  %v295_v17 = vld [vmem:[%s274_s11 + $0x60] sm:$0xff]  ;;  %v296_v18 = vld [vmem:[%s274_s11 + $0x68] sm:$0xff] }
  0x14   : > { %929 = vmatmul.mubr.msk.bf16.vlgmr.msra.gmra.mrb[0].mxu0 %vm322_vm0, %v303_v9  ;;  %v307_v16 = vpack.c.bf16 %v294_v14, %v293_v13  ;;  %v289_v19 = vld [vmem:[%s274_s11 + $0x30] sm:$0xff]  ;;  %v290_v20 = vld [vmem:[%s274_s11 + $0x38] sm:$0xff]  ;;  %v308_v21 = vpack.c.bf16 %v296_v18, %v295_v17 }
  0x15   : > { %932 = vmatprep.mubr.msk.bf16.mxu0 %vm322_vm0, %v304_v10  ;;  %936 = vmatprep.mubr.msk.bf16.mxu1 %vm322_vm0, %v306_v15  ;;  %v305_v22 = vpack.c.bf16 %v290_v20, %v289_v19  ;;  %v297_v23 = vld [vmem:[%s274_s11 + $0x70] sm:$0xff]  ;;  %v298_v24 = vld [vmem:[%s274_s11 + $0x78] sm:$0xff] }
  0x16   : > { %937 = vmatmul.mubr.msk.bf16.vlgmr.msra.gmra.mrb[0].mxu1 %vm322_vm0, %v307_v16  ;;  %v309_v25 = vpack.c.bf16 %v298_v24, %v297_v23  ;;  %965 = vmatpush3.bf16.msra.mxu0 %v997_v27 }
  0x17   : > { %940 = vmatprep.mubr.msk.bf16.mxu1 %vm322_vm0, %v308_v21  ;;  %945 = vmatpush3.bf16.msra.mxu1 %v995_v1  ;;  %v998_v21 = vld [vmem:[%s1158_s5 + $0x8] sm:$0xff]  }
  0x18   : > { %946 = vmatprep.subr.bf16.mxu1 %v996_v26  ;;  %966 = vmatprep.subr.bf16.mxu0 %v998_v21 }
  0x1a   : > { %967 = vmatpush3.bf16.msra.mxu0 %v998_v21 }
  0x1b   : > { %947 = vmatpush3.bf16.msra.mxu1 %v996_v26 }
  0x1c   : > { %933 = vmatmul.mubr.msk.bf16.gmra.mrb[4].mxu0 %vm322_vm0, %v305_v22  ;;  %v873_v22 = vld [vmem:[%s1157_s4] ss:$0 sm:$0xff] }
  0x1e   : > { %941 = vmatmul.mubr.msk.bf16.gmra.mrb[4].mxu1 %vm322_vm0, %v309_v25 }
  0xe7   : > { %v930_v29 = vpop.f32.mrb[0].mxu0 }
  0xe8   : > { %v390_v30 = vadd.f32 %v930_v29, %v863_v28  ;;  %v381_v31 = vpop.f32.mrb[1].mxu0 }
  0xe9   : > { %v382_v32 = vadd.f32 %v863_v28, %v381_v31  ;;  %v931_v33 = vpop.f32.mrb[2].mxu0  ;;  %v938_v36 = vpop.f32.mrb[0].mxu1 }
  0xea   : > { %v393_v34 = vadd.f32 %v931_v33, %v863_v28  ;;  %v384_v35 = vpop.f32.mrb[3].mxu0  ;;  %v422_v38 = vadd.f32 %v938_v36, %v863_v28  ;;  %v413_v39 = vpop.f32.mrb[1].mxu1  ;;  %v446_v40 = vmax.f32 %v390_v30, 0.0 }
  0xeb   : > { %v385_v37 = vadd.f32 %v863_v28, %v384_v35  ;;  %v414_v42 = vadd.f32 %v863_v28, %v413_v39  ;;  %v939_v43 = vpop.f32.mrb[2].mxu1  ;;  %v444_v44 = vmax.f32 %v382_v32, 0.0 }
  0xec   : > { %v447_v41 = vmax.f32 %v393_v34, 0.0  ;;  %v454_v46 = vmax.f32 %v422_v38, 0.0  ;;  %v425_v47 = vadd.f32 %v939_v43, %v863_v28  ;;  %v416_v48 = vpop.f32.mrb[3].mxu1 }
  0xed   : > { %v445_v45 = vmax.f32 %v385_v37, 0.0  ;;  %v452_v50 = vmax.f32 %v414_v42, 0.0  ;;  %v417_v51 = vadd.f32 %v863_v28, %v416_v48 }
  0xee   : > { %v466_v49 = vpack.c.bf16 %v447_v41, %v446_v40  ;;  %v455_v54 = vmax.f32 %v425_v47, 0.0 }
  0xef   : > { %v465_v52 = vpack.c.bf16 %v445_v45, %v444_v44  ;;  %v934_v53 = vpop.f32.mrb[4].mxu0  ;;  %v453_v57 = vmax.f32 %v417_v51, 0.0 }
  0xf0   : > { %v406_v55 = vadd.f32 %v934_v53, %v863_v28  ;;  %v397_v56 = vpop.f32.mrb[5].mxu0  ;;  %v470_v60 = vpack.c.bf16 %v455_v54, %v454_v46 }
  0xf1   : > { %v398_v58 = vadd.f32 %v863_v28, %v397_v56  ;;  %v935_v59 = vpop.f32.mrb[6].mxu0  ;;  %948 = vmatprep.mubr.msk.bf16.mxu1 %vm491_vm1, %v465_v52  ;;  %v469_v63 = vpack.c.bf16 %v453_v57, %v452_v50  ;;  %v942_v0 = vpop.f32.mrb[4].mxu1 }
  0xf2   : > { %v409_v61 = vadd.f32 %v935_v59, %v863_v28  ;;  %v400_v62 = vpop.f32.mrb[7].mxu0  ;;  %949 = vmatmul.mubr.msk.bf16.vlgmr.msra.gmra.mrb[8].mxu1 %vm491_vm1, %v466_v49  ;;  %v438_v2 = vadd.f32 %v942_v0, %v863_v28  ;;  %v429_v3 = vpop.f32.mrb[5].mxu1  ;;  %v450_v4 = vmax.f32 %v406_v55, 0.0 }
  0xf3   : > { %v401_v1 = vadd.f32 %v863_v28, %v400_v62  ;;  %v430_v6 = vadd.f32 %v863_v28, %v429_v3  ;;  %v943_v7 = vpop.f32.mrb[6].mxu1  ;;  %v448_v8 = vmax.f32 %v398_v58, 0.0 }
  0xf4   : > { %v451_v5 = vmax.f32 %v409_v61, 0.0  ;;  %v458_v10 = vmax.f32 %v438_v2, 0.0  ;;  %v441_v11 = vadd.f32 %v943_v7, %v863_v28  ;;  %v432_v12 = vpop.f32.mrb[7].mxu1 }
  0xf5   : > { %v449_v9 = vmax.f32 %v401_v1, 0.0  ;;  %v456_v14 = vmax.f32 %v430_v6, 0.0  ;;  %v433_v15 = vadd.f32 %v863_v28, %v432_v12 }
  0xf6   : > { %v468_v13 = vpack.c.bf16 %v451_v5, %v450_v4  ;;  %v459_v17 = vmax.f32 %v441_v11, 0.0 }
  0xf7   : > { %v467_v16 = vpack.c.bf16 %v449_v9, %v448_v8  ;;  %v457_v18 = vmax.f32 %v433_v15, 0.0  ;;  %v884_v15 = vld [vmem:[%s1159_s6] ss:$0 sm:$0xff] }
  0xf8   : > { %v472_v19 = vpack.c.bf16 %v459_v17, %v458_v10 }
  0xf9   : > { %952 = vmatprep.mubr.msk.bf16.mxu1 %vm491_vm1, %v467_v16  ;;  %v471_v20 = vpack.c.bf16 %v457_v18, %v456_v14 }
  0xfa   : > { %953 = vmatmul.mubr.msk.bf16.gmra.mrb[12].mxu1 %vm491_vm1, %v468_v13 }
  0xfb   : > { %956 = vmatprep.mubr.msk.bf16.mxu1 %vm491_vm1, %v469_v63 }
 0x102   : > { %957 = vmatmul.mubr.msk.bf16.gmra.mrb[16].mxu1 %vm491_vm1, %v470_v60 }
 0x103   : > { %960 = vmatprep.mubr.msk.bf16.mxu1 %vm491_vm1, %v471_v20 }
 0x10a   : > { %961 = vmatmul.mubr.msk.bf16.gmra.mrb[20].mxu1 %vm491_vm1, %v472_v19 }
 0x1c5   : > { %v950_v23 = vpop.f32.mrb[8].mxu1 }
 0x1c6   : > { %v559_v24 = vadd.f32 %v950_v23, %v873_v22  ;;  %v550_v25 = vpop.f32.mrb[9].mxu1 }
 0x1c7   : > { %v551_v26 = vadd.f32 %v873_v22, %v550_v25  ;;  %v951_v27 = vpop.f32.mrb[10].mxu1 }
 0x1c8   : > { %v562_v28 = vadd.f32 %v951_v27, %v873_v22  ;;  %v553_v29 = vpop.f32.mrb[11].mxu1  ;;  %v615_v31 = vmax.f32 %v559_v24, 0.0 }
 0x1c9   : > { %v554_v30 = vadd.f32 %v873_v22, %v553_v29  ;;  %v613_v33 = vmax.f32 %v551_v26, 0.0 }
 0x1ca   : > { %v616_v32 = vmax.f32 %v562_v28, 0.0 }
 0x1cb   : > { %v614_v34 = vmax.f32 %v554_v30, 0.0 }
 0x1cc   : > { %v635_v35 = vpack.c.bf16 %v616_v32, %v615_v31 }
 0x1cd   : > { %v634_v36 = vpack.c.bf16 %v614_v34, %v613_v33  ;;  %v954_v37 = vpop.f32.mrb[12].mxu1 }
 0x1ce   : > { %v575_v38 = vadd.f32 %v954_v37, %v873_v22  ;;  %v566_v39 = vpop.f32.mrb[13].mxu1 }
 0x1cf   : > { %v567_v40 = vadd.f32 %v873_v22, %v566_v39  ;;  %v955_v41 = vpop.f32.mrb[14].mxu1  ;;  %968 = vmatprep.mubr.msk.bf16.mxu0 %vm491_vm1, %v634_v36 }
 0x1d0   : > { %v578_v42 = vadd.f32 %v955_v41, %v873_v22  ;;  %v569_v43 = vpop.f32.mrb[15].mxu1  ;;  %969 = vmatmul.mubr.msk.bf16.vlgmr.msra.gmra.mrb[8].mxu0 %vm491_vm1, %v635_v35  ;;  %v619_v45 = vmax.f32 %v575_v38, 0.0 }
 0x1d1   : > { %v570_v44 = vadd.f32 %v873_v22, %v569_v43  ;;  %v617_v47 = vmax.f32 %v567_v40, 0.0 }
 0x1d2   : > { %v620_v46 = vmax.f32 %v578_v42, 0.0 }
 0x1d3   : > { %v618_v48 = vmax.f32 %v570_v44, 0.0 }
 0x1d4   : > { %v637_v49 = vpack.c.bf16 %v620_v46, %v619_v45 }
 0x1d5   : > { %v636_v50 = vpack.c.bf16 %v618_v48, %v617_v47  ;;  %v958_v51 = vpop.f32.mrb[16].mxu1 }
 0x1d6   : > { %v591_v52 = vadd.f32 %v958_v51, %v873_v22  ;;  %v582_v53 = vpop.f32.mrb[17].mxu1 }
 0x1d7   : > { %v583_v54 = vadd.f32 %v873_v22, %v582_v53  ;;  %v959_v55 = vpop.f32.mrb[18].mxu1  ;;  %972 = vmatprep.mubr.msk.bf16.mxu0 %vm491_vm1, %v636_v50 }
 0x1d8   : > { %v594_v56 = vadd.f32 %v959_v55, %v873_v22  ;;  %v585_v57 = vpop.f32.mrb[19].mxu1  ;;  %973 = vmatmul.mubr.msk.bf16.gmra.mrb[12].mxu0 %vm491_vm1, %v637_v49  ;;  %v623_v59 = vmax.f32 %v591_v52, 0.0 }
 0x1d9   : > { %v586_v58 = vadd.f32 %v873_v22, %v585_v57  ;;  %v621_v61 = vmax.f32 %v583_v54, 0.0 }
 0x1da   : > { %v624_v60 = vmax.f32 %v594_v56, 0.0 }
 0x1db   : > { %v622_v62 = vmax.f32 %v586_v58, 0.0 }
 0x1dc   : > { %v639_v63 = vpack.c.bf16 %v624_v60, %v623_v59 }
 0x1dd   : > { %v638_v0 = vpack.c.bf16 %v622_v62, %v621_v61  ;;  %v962_v1 = vpop.f32.mrb[20].mxu1 }
 0x1de   : > { %v607_v2 = vadd.f32 %v962_v1, %v873_v22  ;;  %v598_v3 = vpop.f32.mrb[21].mxu1 }
 0x1df   : > { %v599_v4 = vadd.f32 %v873_v22, %v598_v3  ;;  %v963_v5 = vpop.f32.mrb[22].mxu1  ;;  %976 = vmatprep.mubr.msk.bf16.mxu0 %vm491_vm1, %v638_v0 }
 0x1e0   : > { %v610_v6 = vadd.f32 %v963_v5, %v873_v22  ;;  %v601_v7 = vpop.f32.mrb[23].mxu1  ;;  %977 = vmatmul.mubr.msk.bf16.gmra.mrb[16].mxu0 %vm491_vm1, %v639_v63  ;;  %v627_v9 = vmax.f32 %v607_v2, 0.0 }
 0x1e1   : > { %v602_v8 = vadd.f32 %v873_v22, %v601_v7  ;;  %v625_v11 = vmax.f32 %v599_v4, 0.0 }
 0x1e2   : > { %v628_v10 = vmax.f32 %v610_v6, 0.0 }
 0x1e3   : > { %v626_v12 = vmax.f32 %v602_v8, 0.0 }
 0x1e4   : > { %v641_v13 = vpack.c.bf16 %v628_v10, %v627_v9 }
 0x1e5   : > { %v640_v14 = vpack.c.bf16 %v626_v12, %v625_v11 }
 0x1e7   : > { %980 = vmatprep.mubr.msk.bf16.mxu0 %vm491_vm1, %v640_v14 }
 0x1e8   : > { %981 = vmatmul.mubr.msk.bf16.gmra.mrb[20].mxu0 %vm491_vm1, %v641_v13 }
 0x2a3   : > { %v970_v16 = vpop.f32.mrb[8].mxu0 }
 0x2a4   : > { %v727_v17 = vadd.f32 %v970_v16, %v884_v15  ;;  %v718_v18 = vpop.f32.mrb[9].mxu0 }
 0x2a5   : > { %v719_v19 = vadd.f32 %v884_v15, %v718_v18  ;;  %v971_v20 = vpop.f32.mrb[10].mxu0 }
 0x2a6   : > { %784 = vst.msk [vmem:[%s1116_s27 + $0x10] sm:$0xff] %vm781_vm2, %v727_v17  ;;  %v730_v21 = vadd.f32 %v971_v20, %v884_v15  ;;  %v721_v22 = vpop.f32.mrb[11].mxu0 }
 0x2a7   : > { %782 = vst.msk [vmem:[%s1116_s27] sm:$0xff] %vm781_vm2, %v719_v19  ;;  %v722_v23 = vadd.f32 %v884_v15, %v721_v22 }
 0x2a8   : > { %785 = vst.msk [vmem:[%s1116_s27 + $0x18] sm:$0xff] %vm781_vm2, %v730_v21 }
 0x2a9   : > { %783 = vst.msk [vmem:[%s1116_s27 + $0x8] sm:$0xff] %vm781_vm2, %v722_v23 }
 0x2ab   : > { %v974_v24 = vpop.f32.mrb[12].mxu0 }
 0x2ac   : > { %v743_v25 = vadd.f32 %v974_v24, %v884_v15  ;;  %v734_v26 = vpop.f32.mrb[13].mxu0 }
 0x2ad   : > { %v735_v27 = vadd.f32 %v884_v15, %v734_v26  ;;  %v975_v28 = vpop.f32.mrb[14].mxu0 }
 0x2ae   : > { %788 = vst.msk [vmem:[%s1116_s27 + $0x30] sm:$0xff] %vm781_vm2, %v743_v25  ;;  %v746_v29 = vadd.f32 %v975_v28, %v884_v15  ;;  %v737_v30 = vpop.f32.mrb[15].mxu0 }
 0x2af   : > { %786 = vst.msk [vmem:[%s1116_s27 + $0x20] sm:$0xff] %vm781_vm2, %v735_v27  ;;  %v738_v31 = vadd.f32 %v884_v15, %v737_v30 }
 0x2b0   : > { %789 = vst.msk [vmem:[%s1116_s27 + $0x38] sm:$0xff] %vm781_vm2, %v746_v29 }
 0x2b1   : > { %787 = vst.msk [vmem:[%s1116_s27 + $0x28] sm:$0xff] %vm781_vm2, %v738_v31 }
 0x2b3   : > { %v978_v32 = vpop.f32.mrb[16].mxu0 }
 0x2b4   : > { %v759_v33 = vadd.f32 %v978_v32, %v884_v15  ;;  %v750_v34 = vpop.f32.mrb[17].mxu0 }
 0x2b5   : > { %v751_v35 = vadd.f32 %v884_v15, %v750_v34  ;;  %v979_v36 = vpop.f32.mrb[18].mxu0 }
 0x2b6   : > { %792 = vst.msk [vmem:[%s1116_s27 + $0x50] sm:$0xff] %vm781_vm2, %v759_v33  ;;  %v762_v37 = vadd.f32 %v979_v36, %v884_v15  ;;  %v753_v38 = vpop.f32.mrb[19].mxu0 }
 0x2b7   : > { %790 = vst.msk [vmem:[%s1116_s27 + $0x40] sm:$0xff] %vm781_vm2, %v751_v35  ;;  %v754_v39 = vadd.f32 %v884_v15, %v753_v38 }
 0x2b8   : > { %793 = vst.msk [vmem:[%s1116_s27 + $0x58] sm:$0xff] %vm781_vm2, %v762_v37 }
 0x2b9   : > { %791 = vst.msk [vmem:[%s1116_s27 + $0x48] sm:$0xff] %vm781_vm2, %v754_v39 }
 0x2bb   : > { %v982_v40 = vpop.f32.mrb[20].mxu0 }
 0x2bc   : > { %v775_v41 = vadd.f32 %v982_v40, %v884_v15  ;;  %v766_v42 = vpop.f32.mrb[21].mxu0 }
 0x2bd   : > { %v767_v43 = vadd.f32 %v884_v15, %v766_v42  ;;  %v983_v44 = vpop.f32.mrb[22].mxu0 }
 0x2be   : > { %796 = vst.msk [vmem:[%s1116_s27 + $0x70] sm:$0xff] %vm781_vm2, %v775_v41  ;;  %v778_v45 = vadd.f32 %v983_v44, %v884_v15  ;;  %v769_v46 = vpop.f32.mrb[23].mxu0 }
 0x2bf   : > { %794 = vst.msk [vmem:[%s1116_s27 + $0x60] sm:$0xff] %vm781_vm2, %v767_v43  ;;  %v770_v47 = vadd.f32 %v884_v15, %v769_v46 }
 0x2c0   : > { %797 = vst.msk [vmem:[%s1116_s27 + $0x78] sm:$0xff] %vm781_vm2, %v778_v45 }
 0x2c1   : > { %795 = vst.msk [vmem:[%s1116_s27 + $0x68] sm:$0xff] %vm781_vm2, %v770_v47 }
 0x2c2 PF: > { %s17_s24 = sadd.s32 1, %s1005_s24  }
 0x2c3   : > { %p14_p4 = scmp.ge.s32.totalorder %s17_s24, 6  }
 0x2c5   :  { %16 = sbr.rel (!%p14_p4) target bundleno = 1 (0x1), region = 78 }

</bundles_post_ra>
